<compile_context>
chip_gen: v6e
topology: v6e:2x2x1
jax: 0.10.0
libtpu: 0.0.40
codegen_flags: <defaults>
</compile_context>

<pallas_src>
import functools

import jax
import jax.numpy as jnp
from jax.experimental import pallas as pl
from jax.experimental.pallas import tpu as pltpu

HIDDEN = 128   # fc1 width (fixed by the PyTorch module)
TB_MAX = 4096  # max batch rows per grid step (overhead amortization)


def _round_up(n, m):
    return ((n + m - 1) // m) * m


def qnet_kernel(x_ref, w1_ref, b1_ref, w2_ref, b2_ref, o_ref):
    # Cast x to bf16 in-kernel (VPU has slack); fc1 on the MXU, f32 accum.
    x = x_ref[...].astype(jnp.bfloat16)                        # (TB, in_dim)
    h = jnp.dot(x, w1_ref[...], preferred_element_type=jnp.float32)
    # Bias add + ReLU in f32 on the VPU (v5e has no bf16 VPU path).
    h = jnp.maximum(h + b1_ref[...], 0.0)                      # (TB, 128)
    # fc2 on the MXU: (TB, 128) bf16 @ (128, out_dim) bf16 -> f32.
    out = jnp.dot(h.astype(jnp.bfloat16), w2_ref[...],
                  preferred_element_type=jnp.float32)
    # Narrow (out_dim-lane) store: masked vst, but the store slot has slack
    # and HBM writeback bytes drop by 128/out_dim vs. a padded slab.
    o_ref[...] = (out + b2_ref[...]).astype(o_ref.dtype)


def prepare_qnet_params(w1, b1, w2, b2):
    """One-time host-side prep (hoisted out of the per-step call path).

    PyTorch layout: w1 (128, input_dim), b1 (128,), w2 (out_dim, 128), b2 (out_dim,).
    Returns (w1_t, b1_r, w2_t, b2_r):
      w1_t : (input_dim, 128) bf16
      b1_r : (1, 128)          f32
      w2_t : (128, out_dim)    bf16
      b2_r : (1, out_dim)      f32
    """
    assert w1.shape[0] == HIDDEN and w2.shape[1] == HIDDEN
    w1_t = jnp.asarray(w1, jnp.float32).T.astype(jnp.bfloat16)   # (in, 128)
    w2_t = jnp.asarray(w2, jnp.float32).T.astype(jnp.bfloat16)   # (128, out)
    b1_r = jnp.asarray(b1, jnp.float32).reshape(1, HIDDEN)
    b2_r = jnp.asarray(b2, jnp.float32).reshape(1, -1)
    return w1_t, b1_r, w2_t, b2_r


@jax.jit
def qnet_forward(x, w1_t, b1_r, w2_t, b2_r):
    """x: (B, input_dim). Returns (B, out_dim) f32."""
    B, in_dim = x.shape
    out_dim = w2_t.shape[1]

    # Batch tile: large to amortize the ~0.35 us per-grid-step overhead, but
    # capped at ~half the batch (rounded to 8 sublanes) so the grid has >= 2
    # roughly balanced steps and v7x's two TensorCores both get work.
    TB = min(TB_MAX, max(8, _round_up(pl.cdiv(B, 2), 8)))
    grid = (pl.cdiv(B, TB),)   # ragged last block is masked; no jnp.pad pass

    itemsize = jnp.dtype(x.dtype).itemsize
    cost = pl.CostEstimate(
        flops=2 * B * HIDDEN * (in_dim + out_dim),
        transcendentals=0,
        bytes_accessed=(B * in_dim * itemsize            # x read
                        + in_dim * HIDDEN * 2            # W1 (bf16)
                        + HIDDEN * out_dim * 2           # W2 (bf16)
                        + (HIDDEN + out_dim) * 4         # biases
                        + B * out_dim * 4))              # output write

    out = pl.pallas_call(
        qnet_kernel,
        out_shape=jax.ShapeDtypeStruct((B, out_dim), jnp.float32),
        grid=grid,
        in_specs=[
            pl.BlockSpec((TB, in_dim), lambda i: (i, 0)),        # x: marches over batch
            pl.BlockSpec((in_dim, HIDDEN), lambda i: (0, 0)),    # W1: VMEM-resident
            pl.BlockSpec((1, HIDDEN), lambda i: (0, 0)),         # b1: resident
            pl.BlockSpec((HIDDEN, out_dim), lambda i: (0, 0)),   # W2: resident
            pl.BlockSpec((1, out_dim), lambda i: (0, 0)),        # b2: resident
        ],
        out_specs=pl.BlockSpec((TB, out_dim), lambda i: (i, 0)), # narrow output
        compiler_params=pltpu.CompilerParams(
            dimension_semantics=("parallel",)),                  # megacore-friendly
        cost_estimate=cost,
    )(x, w1_t, b1_r, w2_t, b2_r)

    return out


def init_qnet_params(key, input_dim, output_dim, hidden=HIDDEN):
    """nn.Linear default init: U(-1/sqrt(fan_in), 1/sqrt(fan_in))."""
    k1, k2, k3, k4 = jax.random.split(key, 4)
    bound1 = 1.0 / jnp.sqrt(jnp.float32(input_dim))
    bound2 = 1.0 / jnp.sqrt(jnp.float32(hidden))
    w1 = jax.random.uniform(k1, (hidden, input_dim), jnp.float32, -bound1, bound1)
    b1 = jax.random.uniform(k2, (hidden,), jnp.float32, -bound1, bound1)
    w2 = jax.random.uniform(k3, (output_dim, hidden), jnp.float32, -bound2, bound2)
    b2 = jax.random.uniform(k4, (output_dim,), jnp.float32, -bound2, bound2)
    return w1, b1, w2, b2


if __name__ == "__main__":
    key = jax.random.PRNGKey(0)
    k_x, k_p = jax.random.split(key)

    batch, input_dim, output_dim = 2, 8, 4
    x = jax.random.normal(k_x, (batch, input_dim), jnp.float32)
    w1, b1, w2, b2 = init_qnet_params(k_p, input_dim, output_dim)

    # One-time parameter prep; the per-step path is just the jitted pallas_call.
    w1_t, b1_r, w2_t, b2_r = prepare_qnet_params(w1, b1, w2, b2)

    out = qnet_forward(x, w1_t, b1_r, w2_t, b2_r)
    out = jax.block_until_ready(out)
    assert out.shape == (batch, output_dim)

    # Tight check against a pure-JAX mirror of the kernel's bf16-MXU numerics.
    xb = x.astype(jnp.bfloat16)
    h_ref = jnp.maximum(
        jnp.dot(xb, w1.astype(jnp.bfloat16).T,
                preferred_element_type=jnp.float32) + b1, 0.0)
    ref_bf16 = jnp.dot(h_ref.astype(jnp.bfloat16), w2.astype(jnp.bfloat16).T,
                       preferred_element_type=jnp.float32) + b2
    assert jnp.allclose(out, ref_bf16, atol=2e-3, rtol=2e-3)

    # Loose check against the full-f32 reference (slack for bf16 rounding).
    # TODO(synk): Q-values carry ~1e-2-scale relative error from bf16 MXU inputs;
    # switch the dots to f32 if TD-target precision ever requires it.
    ref_f32 = jnp.maximum(x @ w1.T + b1, 0.0) @ w2.T + b2
    assert jnp.allclose(out, ref_f32, atol=3e-2, rtol=3e-2)

    # Exercise a larger, ragged batch to cover the multi-step grid path.
    xb_big = jax.random.normal(k_x, (1030, input_dim), jnp.float32)
    out_big = jax.block_until_ready(qnet_forward(xb_big, w1_t, b1_r, w2_t, b2_r))
    ref_big = jnp.maximum(xb_big @ w1.T + b1, 0.0) @ w2.T + b2
    assert out_big.shape == (1030, output_dim)
    assert jnp.allclose(out_big, ref_big, atol=3e-2, rtol=3e-2)

    print("KERNEL_OK")
</pallas_src>

<mosaic_0001>
module attributes {stable_mosaic.version = 11 : i64} {
  func.func @qnet_kernel(%arg0: i32, %arg1: memref<8x8xf32, #tpu.memory_space<vmem>>, %arg2: memref<8x128xbf16, #tpu.memory_space<vmem>>, %arg3: memref<1x128xf32, #tpu.memory_space<vmem>>, %arg4: memref<128x4xbf16, #tpu.memory_space<vmem>>, %arg5: memref<1x4xf32, #tpu.memory_space<vmem>>, %arg6: memref<8x4xf32, #tpu.memory_space<vmem>>) attributes {dimension_semantics = [#tpu.dimension_semantics<parallel>], iteration_bounds = array<i64: 1>, scalar_prefetch = 0 : i64, scratch_operands = 0 : i64, tpu.core_type = #tpu.core_type<tc>, window_params = [{transform_indices = @transform_0, window_bounds = array<i64: 8, 8>}, {pipeline_mode = #tpu.pipeline_mode<synchronous>, transform_indices = @transform_1, window_bounds = array<i64: 8, 128>}, {pipeline_mode = #tpu.pipeline_mode<synchronous>, transform_indices = @transform_2, window_bounds = array<i64: 1, 128>}, {pipeline_mode = #tpu.pipeline_mode<synchronous>, transform_indices = @transform_3, window_bounds = array<i64: 128, 4>}, {pipeline_mode = #tpu.pipeline_mode<synchronous>, transform_indices = @transform_4, window_bounds = array<i64: 1, 4>}, {transform_indices = @transform_5, window_bounds = array<i64: 8, 4>}]} {
    %c0 = arith.constant 0 : index
    %c0_0 = arith.constant 0 : index
    %0 = vector.load %arg1[%c0, %c0_0] : memref<8x8xf32, #tpu.memory_space<vmem>>, vector<8x8xf32>
    %1 = arith.truncf %0 : vector<8x8xf32> to vector<8x8xbf16>
    %c0_1 = arith.constant 0 : index
    %c0_2 = arith.constant 0 : index
    %2 = vector.load %arg2[%c0_1, %c0_2] : memref<8x128xbf16, #tpu.memory_space<vmem>>, vector<8x128xbf16>
    %cst = arith.constant dense<0.000000e+00> : vector<8x128xf32>
    %3 = tpu.matmul %1, %2, %cst {dimension_numbers = #tpu.dot_dimension_numbers<[1], [0], [0], [1], [0, 0, 1, 1], [], []>} : vector<8x8xbf16>, vector<8x128xbf16>, vector<8x128xf32> -> vector<8x128xf32>
    %c0_3 = arith.constant 0 : index
    %c0_4 = arith.constant 0 : index
    %4 = vector.load %arg3[%c0_3, %c0_4] : memref<1x128xf32, #tpu.memory_space<vmem>>, vector<1x128xf32>
    %5 = vector.broadcast %4 : vector<1x128xf32> to vector<8x128xf32>
    %6 = arith.addf %3, %5 : vector<8x128xf32>
    %cst_5 = arith.constant 0.000000e+00 : f32
    %7 = vector.broadcast %cst_5 : f32 to vector<8x128xf32>
    %8 = arith.maximumf %6, %7 : vector<8x128xf32>
    %9 = arith.truncf %8 : vector<8x128xf32> to vector<8x128xbf16>
    %c0_6 = arith.constant 0 : index
    %c0_7 = arith.constant 0 : index
    %10 = vector.load %arg4[%c0_6, %c0_7] : memref<128x4xbf16, #tpu.memory_space<vmem>>, vector<128x4xbf16>
    %cst_8 = arith.constant dense<0.000000e+00> : vector<8x4xf32>
    %11 = tpu.matmul %9, %10, %cst_8 {dimension_numbers = #tpu.dot_dimension_numbers<[1], [0], [0], [1], [0, 0, 1, 1], [], []>} : vector<8x128xbf16>, vector<128x4xbf16>, vector<8x4xf32> -> vector<8x4xf32>
    %c0_9 = arith.constant 0 : index
    %c0_10 = arith.constant 0 : index
    %12 = vector.load %arg5[%c0_9, %c0_10] : memref<1x4xf32, #tpu.memory_space<vmem>>, vector<1x4xf32>
    %13 = vector.broadcast %12 : vector<1x4xf32> to vector<8x4xf32>
    %14 = arith.addf %11, %13 : vector<8x4xf32>
    %c0_11 = arith.constant 0 : index
    %c0_12 = arith.constant 0 : index
    %15 = vector.load %arg6[%c0_11, %c0_12] : memref<8x4xf32, #tpu.memory_space<vmem>>, vector<8x4xf32>
    tpu.vector_store %arg6[%c0_11, %c0_12], %14 {strides = array<i32>} : memref<8x4xf32, #tpu.memory_space<vmem>>, vector<8x4xf32>,
    return
  }
  func.func @transform_0(%arg0: i32) -> (i32, i32) {
    %c0_i32 = arith.constant 0 : i32
    %c0_i32_0 = arith.constant 0 : i32
    return %arg0, %c0_i32 : i32, i32
  }
  func.func @transform_1(%arg0: i32) -> (i32, i32) {
    %c0_i32 = arith.constant 0 : i32
    %c0_i32_0 = arith.constant 0 : i32
    %c0_i32_1 = arith.constant 0 : i32
    return %c0_i32, %c0_i32_0 : i32, i32
  }
  func.func @transform_2(%arg0: i32) -> (i32, i32) {
    %c0_i32 = arith.constant 0 : i32
    %c0_i32_0 = arith.constant 0 : i32
    %c0_i32_1 = arith.constant 0 : i32
    return %c0_i32, %c0_i32_0 : i32, i32
  }
  func.func @transform_3(%arg0: i32) -> (i32, i32) {
    %c0_i32 = arith.constant 0 : i32
    %c0_i32_0 = arith.constant 0 : i32
    %c0_i32_1 = arith.constant 0 : i32
    return %c0_i32, %c0_i32_0 : i32, i32
  }
  func.func @transform_4(%arg0: i32) -> (i32, i32) {
    %c0_i32 = arith.constant 0 : i32
    %c0_i32_0 = arith.constant 0 : i32
    %c0_i32_1 = arith.constant 0 : i32
    return %c0_i32, %c0_i32_0 : i32, i32
  }
  func.func @transform_5(%arg0: i32) -> (i32, i32) {
    %c0_i32 = arith.constant 0 : i32
    %c0_i32_0 = arith.constant 0 : i32
    return %arg0, %c0_i32 : i32, i32
  }
}

</mosaic_0001>

<bundles_post_ra>
// kernel: qnet_forward.1
= control target key start
LH: loop header
LB: loop body
LE: loop exit
PB: predicated region body
PF: predicated region fallthrough
CT: control target
= control target key end

     0   :  { %10 = vsyncpa [#allocation3], 0  ;;  %vm36_vm0 = vcmask 1043456   ;;  %v294_v1 = vmov 0.0   ;;  %vm295_vm1 = vmmov 0   ;;  %vm32_vm2 = vcmask 64512   ;;  %s368_s0 = inlined_call_operand.vmem [shape: f32[2,8], index: 0, kind: input, shape index: {}]   ;;  %s369_s1 = inlined_call_operand.vmem [shape: bf16[8,128], index: 1, kind: input, shape index: {}]   ;;  %s370_s2 = inlined_call_operand.vmem [shape: f32[1,128], index: 2, kind: input, shape index: {}]   ;;  %s371_s3 = inlined_call_operand.vmem [shape: bf16[128,4], index: 3, kind: input, shape index: {}]   ;;  %s372_s4 = inlined_call_operand.vmem [shape: f32[1,4], index: 4, kind: input, shape index: {}]   ;;  %s373_s5 = inlined_call_operand.hbm [shape: f32[2,4], index: 5, kind: output, shape index: {}]  }
   0x1   :  { %v24_v0 = vld [vmem:[%s369_s1] sm:$0xf]  ;;  %233 = vmatprep.subr.bf16.mxu0 %v294_v1  ;;  %239 = vmatprep.subr.bf16.mxu1 %v294_v1  ;;  %v264_v5 = vld [vmem:[%s371_s3 + $0x38] sm:$0xff]   ;;  %v265_v6 = vld [vmem:[%s371_s3 + $0x30] sm:$0xff]   ;;  %vm193_vm3 = vcmask 31744  }
   0x2   :  { %v38_v2 = vsel %vm36_vm0, %v24_v0, 0  ;;  %v22_v3 = vld [vmem:[%s368_s0] sm:$0xff]  ;;  %235 = vmatprep.mubr.msk.bf16.mxu0 %vm295_vm1, %v294_v1  ;;  %255 = vmatprep.mubr.msk.bf16.mxu1 %vm295_vm1, %v294_v1  ;;  %v266_v7 = vld [vmem:[%s371_s3 + $0x28] sm:$0xff]   ;;  %v268_v9 = vld [vmem:[%s371_s3 + $0x18] sm:$0xff]  }
   0x3   :  { %234 = vmatpush3.bf16.msra.mxu0 %v38_v2  ;;  %v23_v4 = vpack.c.bf16 %v22_v3, %v22_v3  ;;  %240 = vmatpush3.bf16.msra.mxu1 %v264_v5  ;;  %v267_v8 = vld [vmem:[%s371_s3 + $0x20] sm:$0xff]   ;;  %v269_v10 = vld [vmem:[%s371_s3 + $0x10] sm:$0xff]   ;;  %v270_v11 = vld [vmem:[%s371_s3 + $0x8] sm:$0xff]  }
   0x4   :  { %241 = vmatprep.subr.bf16.mxu1 %v294_v1  ;;  %v271_v12 = vld [vmem:[%s371_s3] sm:$0xff]  }
   0x5   :  { %v211_v13 = vld [vmem:[%s370_s2] ss:$0 sm:$0xff] }
   0x6   :  { %236 = vmatmul.mubr.msk.bf16.vlgmr.msra.gmra.mxu0 %vm32_vm2, %v23_v4  ;;  %v213_v21 = vld [vmem:[%s372_s4] ss:$0 sm:$0xff] }
   0x7   :  { %242 = vmatpush3.bf16.msra.mxu1 %v265_v6 }
   0x8   :  { %243 = vmatprep.subr.bf16.mxu1 %v294_v1 }
   0xb   :  { %244 = vmatpush3.bf16.msra.mxu1 %v266_v7 }
   0xc   :  { %245 = vmatprep.subr.bf16.mxu1 %v294_v1 }
   0xf   :  { %246 = vmatpush3.bf16.msra.mxu1 %v267_v8 }
  0x10   :  { %247 = vmatprep.subr.bf16.mxu1 %v294_v1 }
  0x13   :  { %248 = vmatpush3.bf16.msra.mxu1 %v268_v9 }
  0x14   :  { %249 = vmatprep.subr.bf16.mxu1 %v294_v1 }
  0x17   :  { %250 = vmatpush3.bf16.msra.mxu1 %v269_v10 }
  0x18   :  { %251 = vmatprep.subr.bf16.mxu1 %v294_v1 }
  0x1b   :  { %252 = vmatpush3.bf16.msra.mxu1 %v270_v11 }
  0x1c   :  { %253 = vmatprep.subr.bf16.mxu1 %v294_v1 }
  0x1f   :  { %254 = vmatpush3.bf16.msra.mxu1 %v271_v12 }
  0xc6   :  { %v74_v14 = vpop.f32.mrf.mxu0 }
  0xc7   :  { %v75_v15 = vadd.f32 %v211_v13, %v74_v14 }
  0xc8   :  { %v237_v16 = vpop.f32.mrf.mxu0 }
  0xc9   :  { %v80_v17 = vmax.f32 %v75_v15, 0.0 }
  0xca   :  { %v77_v18 = vpop.f32.mrf.mxu0 }
  0xcb   :  { %v81_v19 = vpack.c.bf16 %v80_v17, %v80_v17 }
  0xcc   :  { %v238_v20 = vpop.f32.mrf.mxu0 }
  0xcd   :  { %256 = vmatmul.mubr.bf16.vlgmr.msra.gmra.mxu1 %v81_v19 }
 0x18d   :  { %v187_v22 = vpop.f32.mrf.mxu1 }
 0x18e   :  { %v188_v23 = vadd.f32 %v213_v21, %v187_v22 }
 0x18f   :  { %v257_v24 = vpop.f32.mrf.mxu1 }
 0x190   :  { %194 = vst.msk [vmem:[#allocation2] sm:$0xff] %vm193_vm3, %v188_v23 }
 0x191   :  { %v190_v25 = vpop.f32.mrf.mxu1 }
 0x193   :  { %v258_v26 = vpop.f32.mrf.mxu1 }
 0x194   :  { %199 = vsyncadd [#allocation3], 96  ;;  %s296_s2 = smov [#allocation2]  }
 0x195   :  { %s200_s3 = sshll.u32 %s296_s2, 4  ;;  %s201_s3 = int_to_ptr.vmem [resolvable:$true] %s200_s3 }
 0x196   :  { %s272_s15 = scalar_lea.vmem %s201_s3, 32  ;;  %s276_s16 = scalar_lea.vmem %s201_s3, 128 }
 0x197   :  { %p273_p0 = scmp.ne.s32.totalorder %s201_s3, %s272_s15  ;;  %p277_p1 = scmp.lt.s32.totalorder %s201_s3, %s201_s3 }
 0x198   :  { %p278_p2 = scmp.lt.s32.totalorder %s276_s16, %s272_s15 }
 0x19a   :  { %p279_p3 = por %p278_p2, %p277_p1 }
 0x19c   :  { %p280_p4 = pnand %p279_p3, %p273_p0 }
 0x19e   :  { %283 = shalt.err (!%p280_p4)
}
 0x19f   :  { %s297_s4 = smov 32   ;;  %s298_s17 = smov 2  }
 0x1a0   :  { %206 = dma.vmem_to_hbm [thread:$0]  %s201_s3, 32, %s373_s5, [#allocation3], %s297_s4, %s297_s4, %s298_s17  }
 0x1a1   :  { %292 = dma.done.wait [#allocation3], 128  }
 0x1a2   :  { %293 = vsyncadd [#allocation3], 4294967168 }
 0x1a3   :  { %210 = vsyncpa [#allocation3], 1 }

</bundles_post_ra>
